<compile_context>
chip_gen: v7x
topology: tpu7x:2x2x1
jax: 0.10.0
libtpu: 0.0.40
codegen_flags: <defaults>
</compile_context>

<pallas_src>
import numpy as np

import jax
import jax.numpy as jnp
from jax.experimental import pallas as pl
from jax.experimental.pallas import tpu as pltpu


def _round_up(x, m):
    return ((x + m - 1) // m) * m


def cnn_kernel(x_ref, wc_ref, bf_ref, w1_ref, b1_ref, w2_ref, b2_ref, out_ref):
    # x_ref : (L, TB)        bf16  input, batch in lanes
    # wc_ref: (2*Kpad, L)    bf16  fused Toeplitz conv weights (even rows | odd rows)
    # bf_ref: (Kpad, 1)      f32   conv bias per (pooled position, channel) row
    # w1_ref: (H, Kpad)      bf16  fc1 weight (columns permuted to time-major, padded)
    # b1_ref: (H, 1)         f32
    # w2_ref: (NCr, H)       bf16  fc2 weight (rows padded to NCr)
    # b2_ref: (NCr, 1)       f32
    # out_ref:(NCr, TB)      f32
    kpad = bf_ref.shape[0]
    x = x_ref[...]
    r = jnp.dot(wc_ref[...], x, preferred_element_type=jnp.float32)   # (2*Kpad, TB)
    e = r[:kpad, :]
    o = r[kpad:, :]
    # max(relu(e+b), relu(o+b)) == relu(max(e,o)+b)  (relu monotone, shared bias)
    flat = jnp.maximum(jnp.maximum(e, o) + bf_ref[...], 0.0)          # (Kpad, TB) f32
    h = jnp.maximum(
        jnp.dot(w1_ref[...], flat.astype(jnp.bfloat16),
                preferred_element_type=jnp.float32) + b1_ref[...],
        0.0,
    )                                                                  # (H, TB) f32
    out_ref[...] = (
        jnp.dot(w2_ref[...], h.astype(jnp.bfloat16),
                preferred_element_type=jnp.float32) + b2_ref[...]
    )


def prepare_params(params, input_dim):
    """One-time parameter prep (numpy, hoisted out of the per-call path)."""
    wconv, bconv, w1, b1, w2, b2 = params
    Cout, Cin, K = wconv.shape
    assert Cin == 1
    L = input_dim
    Lout = L - K + 1
    Lp = Lout // 2
    hidden = w1.shape[0]
    num_classes = w2.shape[0]

    F = Lp * Cout
    Kpad = _round_up(F, 128)              # tile-aligned fc1 contraction (224 -> 256)
    NCr = _round_up(num_classes, 8)       # class rows padded to a sublane multiple

    wck = np.asarray(wconv[:, 0, :], np.float32)                       # (C, K)

    # Fused Toeplitz conv weight: row t*C + c (time-major, pooled position t, channel c),
    # column = input position.  Even pooled tap reads x[2t + k], odd tap reads x[2t+1 + k].
    wc = np.zeros((2 * Kpad, L), np.float32)
    for t in range(Lp):
        for k in range(K):
            wc[t * Cout:(t + 1) * Cout, 2 * t + k] = wck[:, k]          # even tap
            wc[Kpad + t * Cout:Kpad + (t + 1) * Cout, 2 * t + 1 + k] = wck[:, k]  # odd tap

    bf = np.zeros((Kpad, 1), np.float32)
    bf[:F, 0] = np.tile(np.asarray(bconv, np.float32), Lp)

    # fc1: PyTorch flatten of pooled (B, C, Lp) is channel-major (col = c*Lp + t);
    # kernel flat rows are time-major (row = t*C + c) -> permute columns, pad to Kpad.
    w1_np = np.asarray(w1, np.float32).reshape(hidden, Cout, Lp)
    w1_tm = np.transpose(w1_np, (0, 2, 1)).reshape(hidden, F)
    w1t = np.zeros((hidden, Kpad), np.float32)
    w1t[:, :F] = w1_tm
    b1t = np.asarray(b1, np.float32).reshape(hidden, 1)

    w2t = np.zeros((NCr, hidden), np.float32)
    w2t[:num_classes] = np.asarray(w2, np.float32)
    b2t = np.zeros((NCr, 1), np.float32)
    b2t[:num_classes, 0] = np.asarray(b2, np.float32)

    return {
        "wc": jnp.asarray(wc, jnp.bfloat16),
        "bf": jnp.asarray(bf, jnp.float32),
        "w1": jnp.asarray(w1t, jnp.bfloat16),
        "b1": jnp.asarray(b1t, jnp.float32),
        "w2": jnp.asarray(w2t, jnp.bfloat16),
        "b2": jnp.asarray(b2t, jnp.float32),
        "dims": (L, Kpad, hidden, NCr, num_classes),
    }


def cnn_forward(x, prep, *, tb=512):
    """x: (B, 1, L) float32 (PyTorch NCL layout).  Returns (B, num_classes) float32."""
    L, Kpad, hidden, NCr, num_classes = prep["dims"]
    B = x.shape[0]
    assert x.shape[1] == 1 and x.shape[2] == L

    # Batch tile: large (sweep 512-2048) to amortize per-grid-step overhead, clamped for
    # small batches.  On v7x, pick tb such that Bp // tb >= 2 to occupy both TensorCores.
    tb_eff = min(tb, _round_up(B, 128))
    Bp = _round_up(B, tb_eff)

    # Batch-in-lanes layout: (L, Bp) bf16; pad only when needed.
    xt = jnp.transpose(x[:, 0, :]).astype(jnp.bfloat16)
    if Bp != B:
        xt = jnp.pad(xt, ((0, 0), (0, Bp - B)))

    out = pl.pallas_call(
        cnn_kernel,
        out_shape=jax.ShapeDtypeStruct((NCr, Bp), jnp.float32),
        grid=(Bp // tb_eff,),
        in_specs=[
            pl.BlockSpec((L, tb_eff), lambda i: (0, i)),        # x: tiled over batch lanes
            pl.BlockSpec((2 * Kpad, L), lambda i: (0, 0)),      # weights: VMEM-resident
            pl.BlockSpec((Kpad, 1), lambda i: (0, 0)),
            pl.BlockSpec((hidden, Kpad), lambda i: (0, 0)),
            pl.BlockSpec((hidden, 1), lambda i: (0, 0)),
            pl.BlockSpec((NCr, hidden), lambda i: (0, 0)),
            pl.BlockSpec((NCr, 1), lambda i: (0, 0)),
        ],
        out_specs=pl.BlockSpec((NCr, tb_eff), lambda i: (0, i)),
        compiler_params=pltpu.CompilerParams(
            dimension_semantics=("parallel",),
        ),
    )(xt, prep["wc"], prep["bf"], prep["w1"], prep["b1"], prep["w2"], prep["b2"])

    return jnp.transpose(out[:num_classes, :B])


def reference_forward(x, params):
    """Pure-JAX f32 reference with exact PyTorch semantics (NCL conv, channel-major flatten)."""
    wconv, bconv, w1, b1, w2, b2 = params
    B, _, L = x.shape
    Cout, _, K = wconv.shape
    Lout = L - K + 1
    Lp = Lout // 2
    xb = x[:, 0, :]
    patches = jnp.stack([xb[:, k:k + Lout] for k in range(K)], axis=-1)   # (B, Lout, K)
    conv = jnp.einsum("blk,ck->bcl", patches, wconv[:, 0, :]) + bconv[None, :, None]
    r = jnp.maximum(conv, 0.0)                                            # (B, C, Lout)
    pooled = jnp.max(r[:, :, : 2 * Lp].reshape(B, Cout, Lp, 2), axis=-1)  # (B, C, Lp)
    flat = pooled.reshape(B, Cout * Lp)
    h = jnp.maximum(flat @ w1.T + b1, 0.0)
    return h @ w2.T + b2


def init_params(key, input_dim, num_classes):
    Lout = input_dim - 2
    Lp = Lout // 2
    ks = jax.random.split(key, 6)
    wconv = 0.1 * jax.random.normal(ks[0], (32, 1, 3), jnp.float32)
    bconv = 0.1 * jax.random.normal(ks[1], (32,), jnp.float32)
    w1 = 0.1 * jax.random.normal(ks[2], (128, 32 * Lp), jnp.float32)
    b1 = 0.1 * jax.random.normal(ks[3], (128,), jnp.float32)
    w2 = 0.1 * jax.random.normal(ks[4], (num_classes, 128), jnp.float32)
    b2 = 0.1 * jax.random.normal(ks[5], (num_classes,), jnp.float32)
    return (wconv, bconv, w1, b1, w2, b2)


if __name__ == "__main__":
    B, input_dim, num_classes = 2, 16, 10
    key = jax.random.PRNGKey(0)
    kx, kp = jax.random.split(key)
    x = jax.random.normal(kx, (B, 1, input_dim), jnp.float32)
    params = init_params(kp, input_dim, num_classes)

    prep = prepare_params(params, input_dim)       # one-time parameter prep
    out = cnn_forward(x, prep)
    out = jax.block_until_ready(out)

    ref = reference_forward(x, params)
    assert out.shape == (B, num_classes)
    # bf16 matmul operands (f32 accumulation) -> looser tolerance than a pure-f32 kernel.
    assert jnp.allclose(out, ref, atol=5e-2, rtol=5e-2), (out, ref)
    print("KERNEL_OK")
</pallas_src>

<mosaic_0001>
module attributes {stable_mosaic.version = 11 : i64} {
  func.func @cnn_kernel(%arg0: i32, %arg1: memref<16x128xbf16, #tpu.memory_space<vmem>>, %arg2: memref<512x16xbf16, #tpu.memory_space<vmem>>, %arg3: memref<256x1xf32, #tpu.memory_space<vmem>>, %arg4: memref<128x256xbf16, #tpu.memory_space<vmem>>, %arg5: memref<128x1xf32, #tpu.memory_space<vmem>>, %arg6: memref<16x128xbf16, #tpu.memory_space<vmem>>, %arg7: memref<16x1xf32, #tpu.memory_space<vmem>>, %arg8: memref<16x128xf32, #tpu.memory_space<vmem>>) attributes {dimension_semantics = [#tpu.dimension_semantics<parallel>], iteration_bounds = array<i64: 1>, scalar_prefetch = 0 : i64, scratch_operands = 0 : i64, tpu.core_type = #tpu.core_type<tc>, window_params = [{transform_indices = @transform_0, window_bounds = array<i64: 16, 128>}, {pipeline_mode = #tpu.pipeline_mode<synchronous>, transform_indices = @transform_1, window_bounds = array<i64: 512, 16>}, {pipeline_mode = #tpu.pipeline_mode<synchronous>, transform_indices = @transform_2, window_bounds = array<i64: 256, 1>}, {pipeline_mode = #tpu.pipeline_mode<synchronous>, transform_indices = @transform_3, window_bounds = array<i64: 128, 256>}, {pipeline_mode = #tpu.pipeline_mode<synchronous>, transform_indices = @transform_4, window_bounds = array<i64: 128, 1>}, {pipeline_mode = #tpu.pipeline_mode<synchronous>, transform_indices = @transform_5, window_bounds = array<i64: 16, 128>}, {pipeline_mode = #tpu.pipeline_mode<synchronous>, transform_indices = @transform_6, window_bounds = array<i64: 16, 1>}, {transform_indices = @transform_7, window_bounds = array<i64: 16, 128>}]} {
    %c0 = arith.constant 0 : index
    %c0_0 = arith.constant 0 : index
    %0 = vector.load %arg1[%c0, %c0_0] : memref<16x128xbf16, #tpu.memory_space<vmem>>, vector<16x128xbf16>
    %c0_1 = arith.constant 0 : index
    %c0_2 = arith.constant 0 : index
    %1 = vector.load %arg2[%c0_1, %c0_2] : memref<512x16xbf16, #tpu.memory_space<vmem>>, vector<512x16xbf16>
    %cst = arith.constant dense<0.000000e+00> : vector<512x128xf32>
    %2 = tpu.matmul %1, %0, %cst {dimension_numbers = #tpu.dot_dimension_numbers<[1], [0], [0], [1], [0, 0, 1, 1], [], []>} : vector<512x16xbf16>, vector<16x128xbf16>, vector<512x128xf32> -> vector<512x128xf32>
    %3 = vector.extract_strided_slice %2 {offsets = [0, 0], sizes = [256, 128], strides = [1, 1]} : vector<512x128xf32> to vector<256x128xf32>
    %4 = vector.extract_strided_slice %2 {offsets = [256, 0], sizes = [256, 128], strides = [1, 1]} : vector<512x128xf32> to vector<256x128xf32>
    %5 = arith.maximumf %3, %4 : vector<256x128xf32>
    %c0_3 = arith.constant 0 : index
    %c0_4 = arith.constant 0 : index
    %6 = vector.load %arg3[%c0_3, %c0_4] : memref<256x1xf32, #tpu.memory_space<vmem>>, vector<256x1xf32>
    %7 = vector.broadcast %6 : vector<256x1xf32> to vector<256x128xf32>
    %8 = arith.addf %5, %7 : vector<256x128xf32>
    %cst_5 = arith.constant 0.000000e+00 : f32
    %9 = vector.broadcast %cst_5 : f32 to vector<256x128xf32>
    %10 = arith.maximumf %8, %9 : vector<256x128xf32>
    %c0_6 = arith.constant 0 : index
    %c0_7 = arith.constant 0 : index
    %11 = vector.load %arg4[%c0_6, %c0_7] : memref<128x256xbf16, #tpu.memory_space<vmem>>, vector<128x256xbf16>
    %12 = arith.truncf %10 : vector<256x128xf32> to vector<256x128xbf16>
    %cst_8 = arith.constant dense<0.000000e+00> : vector<128x128xf32>
    %13 = tpu.matmul %11, %12, %cst_8 {dimension_numbers = #tpu.dot_dimension_numbers<[1], [0], [0], [1], [0, 0, 1, 1], [], []>} : vector<128x256xbf16>, vector<256x128xbf16>, vector<128x128xf32> -> vector<128x128xf32>
    %c0_9 = arith.constant 0 : index
    %c0_10 = arith.constant 0 : index
    %14 = vector.load %arg5[%c0_9, %c0_10] : memref<128x1xf32, #tpu.memory_space<vmem>>, vector<128x1xf32>
    %15 = vector.broadcast %14 : vector<128x1xf32> to vector<128x128xf32>
    %16 = arith.addf %13, %15 : vector<128x128xf32>
    %cst_11 = arith.constant 0.000000e+00 : f32
    %17 = vector.broadcast %cst_11 : f32 to vector<128x128xf32>
    %18 = arith.maximumf %16, %17 : vector<128x128xf32>
    %c0_12 = arith.constant 0 : index
    %c0_13 = arith.constant 0 : index
    %19 = vector.load %arg6[%c0_12, %c0_13] : memref<16x128xbf16, #tpu.memory_space<vmem>>, vector<16x128xbf16>
    %20 = arith.truncf %18 : vector<128x128xf32> to vector<128x128xbf16>
    %cst_14 = arith.constant dense<0.000000e+00> : vector<16x128xf32>
    %21 = tpu.matmul %19, %20, %cst_14 {dimension_numbers = #tpu.dot_dimension_numbers<[1], [0], [0], [1], [0, 0, 1, 1], [], []>} : vector<16x128xbf16>, vector<128x128xbf16>, vector<16x128xf32> -> vector<16x128xf32>
    %c0_15 = arith.constant 0 : index
    %c0_16 = arith.constant 0 : index
    %22 = vector.load %arg7[%c0_15, %c0_16] : memref<16x1xf32, #tpu.memory_space<vmem>>, vector<16x1xf32>
    %23 = vector.broadcast %22 : vector<16x1xf32> to vector<16x128xf32>
    %24 = arith.addf %21, %23 : vector<16x128xf32>
    %c0_17 = arith.constant 0 : index
    %c0_18 = arith.constant 0 : index
    %25 = vector.load %arg8[%c0_17, %c0_18] : memref<16x128xf32, #tpu.memory_space<vmem>>, vector<16x128xf32>
    tpu.vector_store %arg8[%c0_17, %c0_18], %24 {strides = array<i32>} : memref<16x128xf32, #tpu.memory_space<vmem>>, vector<16x128xf32>,
    return
  }
  func.func @transform_0(%arg0: i32) -> (i32, i32) {
    %c0_i32 = arith.constant 0 : i32
    %c0_i32_0 = arith.constant 0 : i32
    return %c0_i32, %arg0 : i32, i32
  }
  func.func @transform_1(%arg0: i32) -> (i32, i32) {
    %c0_i32 = arith.constant 0 : i32
    %c0_i32_0 = arith.constant 0 : i32
    %c0_i32_1 = arith.constant 0 : i32
    return %c0_i32, %c0_i32_0 : i32, i32
  }
  func.func @transform_2(%arg0: i32) -> (i32, i32) {
    %c0_i32 = arith.constant 0 : i32
    %c0_i32_0 = arith.constant 0 : i32
    %c0_i32_1 = arith.constant 0 : i32
    return %c0_i32, %c0_i32_0 : i32, i32
  }
  func.func @transform_3(%arg0: i32) -> (i32, i32) {
    %c0_i32 = arith.constant 0 : i32
    %c0_i32_0 = arith.constant 0 : i32
    %c0_i32_1 = arith.constant 0 : i32
    return %c0_i32, %c0_i32_0 : i32, i32
  }
  func.func @transform_4(%arg0: i32) -> (i32, i32) {
    %c0_i32 = arith.constant 0 : i32
    %c0_i32_0 = arith.constant 0 : i32
    %c0_i32_1 = arith.constant 0 : i32
    return %c0_i32, %c0_i32_0 : i32, i32
  }
  func.func @transform_5(%arg0: i32) -> (i32, i32) {
    %c0_i32 = arith.constant 0 : i32
    %c0_i32_0 = arith.constant 0 : i32
    %c0_i32_1 = arith.constant 0 : i32
    return %c0_i32, %c0_i32_0 : i32, i32
  }
  func.func @transform_6(%arg0: i32) -> (i32, i32) {
    %c0_i32 = arith.constant 0 : i32
    %c0_i32_0 = arith.constant 0 : i32
    %c0_i32_1 = arith.constant 0 : i32
    return %c0_i32, %c0_i32_0 : i32, i32
  }
  func.func @transform_7(%arg0: i32) -> (i32, i32) {
    %c0_i32 = arith.constant 0 : i32
    %c0_i32_0 = arith.constant 0 : i32
    return %c0_i32, %arg0 : i32, i32
  }
}

</mosaic_0001>

<bundles_post_ra>
// kernel: tpu_custom_call.1
= control target key start
LH: loop header
LB: loop body
LE: loop exit
PB: predicated region body
PF: predicated region fallthrough
CT: control target
= control target key end

     0   :  { %vm260_vm0 = vcmask 130048   ;;  %v1706_v3 = vmov 0   ;;  %s2273_s0 = inlined_call_operand.vmem [shape: bf16[16,128], index: 0, kind: input, shape index: {}]   ;;  %s2274_s1 = inlined_call_operand.vmem [shape: bf16[512,16], index: 1, kind: input, shape index: {}]   ;;  %s2275_s2 = inlined_call_operand.vmem [shape: f32[256,1], index: 2, kind: input, shape index: {}]   ;;  %s2276_s3 = inlined_call_operand.vmem [shape: bf16[128,256], index: 3, kind: input, shape index: {}]   ;;  %s2277_s4 = inlined_call_operand.vmem [shape: f32[128,1], index: 4, kind: input, shape index: {}]   ;;  %s2278_s5 = inlined_call_operand.vmem [shape: bf16[16,128], index: 5, kind: input, shape index: {}]   ;;  %s2279_s6 = inlined_call_operand.vmem [shape: f32[16,1], index: 6, kind: input, shape index: {}]   ;;  %s2280_s7 = inlined_call_operand.hbm [shape: f32[16,128], index: 7, kind: output, shape index: {}]  }
   0x1   :  { %v1624_v0 = vld [vmem:[%s2273_s0] sm:$0xff]   ;;  %v1626_v2 = vld [vmem:[%s2274_s1 + $0x8] sm:$0xff]   ;;  %1623 = vset.pattern.permute.xlu1 %v1706_v3  ;;  %v1627_v4 = vld [vmem:[%s2274_s1 + $0x10] sm:$0xff]   ;;  %1622 = vset.pattern.permute.xlu0 %v1706_v3 }
   0x2   :  { %v1625_v1 = vld [vmem:[%s2274_s1] sm:$0xff]   ;;  %1530 = vmatprep.subr.bf16.mxu0 %v1624_v0  ;;  %v1628_v5 = vld [vmem:[%s2274_s1 + $0x18] sm:$0xff]   ;;  %v1630_v7 = vld [vmem:[%s2274_s1 + $0x28] sm:$0xff]  }
   0x3   :  { %1531 = vmatpush3.bf16.msra.mxu0 %v1624_v0  ;;  %1532 = vmatprep.mubr.msk.bf16.mxu0 %vm260_vm0, %v1625_v1  ;;  %v1629_v6 = vld [vmem:[%s2274_s1 + $0x20] sm:$0xff]   ;;  %v1631_v10 = vld [vmem:[%s2274_s1 + $0x30] sm:$0xff]   ;;  %v695_v11 = vld [vmem:[%s2275_s2 + $0x88] sm:$0xff] }
   0x4   :  { %v694_v8 = vld [vmem:[%s2275_s2 + $0x80] sm:$0xff]  ;;  %v679_v12 = vld [vmem:[%s2275_s2 + $0x8] sm:$0xff]  ;;  %v696_v13 = vld [vmem:[%s2275_s2 + $0x90] sm:$0xff] }
   0x5   :  { %v678_v9 = vld [vmem:[%s2275_s2] sm:$0xff]  ;;  %792 = vperm.xlu0 %1622, %v694_v8   ;;  %v697_v14 = vld [vmem:[%s2275_s2 + $0x98] sm:$0xff]  ;;  %v680_v17 = vld [vmem:[%s2275_s2 + $0x10] sm:$0xff] }
   0x6   :  { %1533 = vmatmul.mubr.msk.bf16.vlgmr.msra.gmra.mrb[0].mxu0 %vm260_vm0, %v1626_v2  ;;  %712 = vperm.xlu1 %1623, %v678_v9   ;;  %v1632_v15 = vld [vmem:[%s2274_s1 + $0x38] sm:$0xff]   ;;  %v1633_v16 = vld [vmem:[%s2274_s1 + $0x40] sm:$0xff]   ;;  %v699_v20 = vld [vmem:[%s2275_s2 + $0xa8] sm:$0xff] }
   0x7   :  { %1536 = vmatprep.mubr.msk.bf16.mxu0 %vm260_vm0, %v1627_v4  ;;  %v681_v18 = vld [vmem:[%s2275_s2 + $0x18] sm:$0xff]  ;;  %v698_v19 = vld [vmem:[%s2275_s2 + $0xa0] sm:$0xff]  ;;  %v1634_v21 = vld [vmem:[%s2274_s1 + $0x48] sm:$0xff]  }
   0x8   :  { %v1635_v22 = vld [vmem:[%s2274_s1 + $0x50] sm:$0xff]   ;;  %v682_v23 = vld [vmem:[%s2275_s2 + $0x20] sm:$0xff]  ;;  %v683_v24 = vld [vmem:[%s2275_s2 + $0x28] sm:$0xff] }
   0x9   :  { %797 = vperm.xlu0 %1622, %v695_v11   ;;  %v700_v25 = vld [vmem:[%s2275_s2 + $0xb0] sm:$0xff]  ;;  %v701_v26 = vld [vmem:[%s2275_s2 + $0xb8] sm:$0xff]  ;;  %v1637_v28 = vld [vmem:[%s2274_s1 + $0x60] sm:$0xff]  }
   0xa   :  { %717 = vperm.xlu1 %1623, %v679_v12   ;;  %v1636_v27 = vld [vmem:[%s2274_s1 + $0x58] sm:$0xff]   ;;  %v684_v29 = vld [vmem:[%s2275_s2 + $0x30] sm:$0xff]  ;;  %v702_v31 = vld [vmem:[%s2275_s2 + $0xc0] sm:$0xff] }
   0xb   :  { %v685_v30 = vld [vmem:[%s2275_s2 + $0x38] sm:$0xff]  ;;  %v1638_v32 = vld [vmem:[%s2274_s1 + $0x68] sm:$0xff]   ;;  %v1639_v34 = vld [vmem:[%s2274_s1 + $0x70] sm:$0xff]  }
   0xc   :  { %v703_v33 = vld [vmem:[%s2275_s2 + $0xc8] sm:$0xff]  ;;  %v686_v35 = vld [vmem:[%s2275_s2 + $0x40] sm:$0xff]  ;;  %v704_v37 = vld [vmem:[%s2275_s2 + $0xd0] sm:$0xff] }
   0xd   :  { %802 = vperm.xlu0 %1622, %v696_v13   ;;  %v687_v36 = vld [vmem:[%s2275_s2 + $0x48] sm:$0xff] }
   0xe   :  { %1537 = vmatmul.mubr.msk.bf16.gmra.mrb[4].mxu0 %vm260_vm0, %v1628_v5  ;;  %807 = vperm.xlu1 %1623, %v697_v14  }
   0xf   :  { %1540 = vmatprep.mubr.msk.bf16.mxu0 %vm260_vm0, %v1629_v6 }
  0x11   :  { %722 = vperm.xlu0 %1622, %v680_v17  }
  0x12   :  { %727 = vperm.xlu1 %1623, %v681_v18  }
  0x15   :  { %812 = vperm.xlu0 %1622, %v698_v19  }
  0x16   :  { %1541 = vmatmul.mubr.msk.bf16.gmra.mrb[8].mxu0 %vm260_vm0, %v1630_v7  ;;  %817 = vperm.xlu1 %1623, %v699_v20  }
  0x17   :  { %1544 = vmatprep.mubr.msk.bf16.mxu0 %vm260_vm0, %v1631_v10 }
  0x19   :  { %732 = vperm.xlu0 %1622, %v682_v23  }
  0x1a   :  { %737 = vperm.xlu1 %1623, %v683_v24  }
  0x1d   :  { %822 = vperm.xlu0 %1622, %v700_v25  }
  0x1e   :  { %1545 = vmatmul.mubr.msk.bf16.gmra.mrb[12].mxu0 %vm260_vm0, %v1632_v15  ;;  %827 = vperm.xlu1 %1623, %v701_v26  }
  0x1f   :  { %1548 = vmatprep.mubr.msk.bf16.mxu0 %vm260_vm0, %v1633_v16 }
  0x21   :  { %742 = vperm.xlu0 %1622, %v684_v29  }
  0x22   :  { %747 = vperm.xlu1 %1623, %v685_v30  }
  0x25   :  { %832 = vperm.xlu0 %1622, %v702_v31  }
  0x26   :  { %1549 = vmatmul.mubr.msk.bf16.gmra.mrb[16].mxu0 %vm260_vm0, %v1634_v21  ;;  %837 = vperm.xlu1 %1623, %v703_v33  }
  0x27   :  { %1552 = vmatprep.mubr.msk.bf16.mxu0 %vm260_vm0, %v1635_v22 }
  0x29   :  { %752 = vperm.xlu0 %1622, %v686_v35  }
  0x2a   :  { %757 = vperm.xlu1 %1623, %v687_v36  }
  0x2e   :  { %1553 = vmatmul.mubr.msk.bf16.gmra.mrb[20].mxu0 %vm260_vm0, %v1636_v27 }
  0x2f   :  { %1556 = vmatprep.mubr.msk.bf16.mxu0 %vm260_vm0, %v1637_v28 }
  0x36   :  { %1557 = vmatmul.mubr.msk.bf16.gmra.mrb[24].mxu0 %vm260_vm0, %v1638_v32 }
  0x37   :  { %1560 = vmatprep.mubr.msk.bf16.mxu0 %vm260_vm0, %v1639_v34 }
  0x38   :  { %12 = vsyncpa [#allocation3], 0  ;;  %v705_v38 = vld [vmem:[%s2275_s2 + $0xd8] sm:$0xff]  ;;  %842 = vperm.xlu0 %1622, %v704_v37   ;;  %v1641_v40 = vld [vmem:[%s2274_s1 + $0x80] sm:$0xff]   ;;  %vm1708_vm1 = vmmov 0   ;;  %s1709_s21 = smov [#allocation2]  }
  0x39   :  { %v1640_v39 = vld [vmem:[%s2274_s1 + $0x78] sm:$0xff]   ;;  %847 = vperm.xlu1 %1623, %v705_v38   ;;  %v688_v41 = vld [vmem:[%s2275_s2 + $0x50] sm:$0xff]  ;;  %v706_v43 = vld [vmem:[%s2275_s2 + $0xe0] sm:$0xff]  ;;  %s1331_s22 = sshll.u32 %s1709_s21, 4  ;;  %s1332_s22 = int_to_ptr.vmem [resolvable:$true] %s1331_s22 }
  0x3a   :  { %v689_v42 = vld [vmem:[%s2275_s2 + $0x58] sm:$0xff]  ;;  %v707_v44 = vld [vmem:[%s2275_s2 + $0xe8] sm:$0xff]  ;;  %v1643_v46 = vld [vmem:[%s2274_s1 + $0x90] sm:$0xff]   ;;  %s1682_s23 = scalar_lea.vmem %s1332_s22, 256  ;;  %p1687_p1 = scmp.lt.s32.totalorder %s1332_s22, %s1332_s22 }
  0x3b   :  { %v1642_v45 = vld [vmem:[%s2274_s1 + $0x88] sm:$0xff]   ;;  %v690_v47 = vld [vmem:[%s2275_s2 + $0x60] sm:$0xff]  ;;  %v708_v49 = vld [vmem:[%s2275_s2 + $0xf0] sm:$0xff]  ;;  %p1683_p0 = scmp.ne.s32.totalorder %s1332_s22, %s1682_s23  ;;  %p1688_p2 = scmp.lt.s32.totalorder %s1682_s23, %s1682_s23 }
  0x3c   :  { %762 = vperm.xlu0 %1622, %v688_v41   ;;  %v691_v48 = vld [vmem:[%s2275_s2 + $0x68] sm:$0xff]  ;;  %v709_v50 = vld [vmem:[%s2275_s2 + $0xf8] sm:$0xff]  ;;  %v1645_v52 = vld [vmem:[%s2274_s1 + $0xa0] sm:$0xff]  }
  0x3d   :  { %767 = vperm.xlu1 %1623, %v689_v42   ;;  %v1644_v51 = vld [vmem:[%s2274_s1 + $0x98] sm:$0xff]   ;;  %v692_v53 = vld [vmem:[%s2275_s2 + $0x70] sm:$0xff]  ;;  %v966_v55 = vld [vmem:[%s2277_s4] sm:$0xff]  ;;  %p1689_p3 = por %p1688_p2, %p1687_p1 }
  0x3e   :  { %1561 = vmatmul.mubr.msk.bf16.gmra.mrb[28].mxu0 %vm260_vm0, %v1640_v39  ;;  %v693_v54 = vld [vmem:[%s2275_s2 + $0x78] sm:$0xff]  ;;  %v967_v56 = vld [vmem:[%s2277_s4 + $0x8] sm:$0xff]  ;;  %v1647_v58 = vld [vmem:[%s2274_s1 + $0xb0] sm:$0xff]  }
  0x3f   :  { %1564 = vmatprep.mubr.msk.bf16.mxu0 %vm260_vm0, %v1641_v40  ;;  %v1646_v57 = vld [vmem:[%s2274_s1 + $0xa8] sm:$0xff]   ;;  %v968_v59 = vld [vmem:[%s2277_s4 + $0x10] sm:$0xff]  ;;  %v969_v60 = vld [vmem:[%s2277_s4 + $0x18] sm:$0xff]  ;;  %p1690_p4 = pnand %p1689_p3, %p1683_p0 }
  0x40   :  { %852 = vperm.xlu0 %1622, %v706_v43   ;;  %v970_v61 = vld [vmem:[%s2277_s4 + $0x20] sm:$0xff]  ;;  %v971_v62 = vld [vmem:[%s2277_s4 + $0x28] sm:$0xff]  ;;  %v1648_v63 = vld [vmem:[%s2274_s1 + $0xb8] sm:$0xff]  }
  0x41   :  { %857 = vperm.xlu1 %1623, %v707_v44   ;;  %v1649_v0 = vld [vmem:[%s2274_s1 + $0xc0] sm:$0xff]   ;;  %v972_v1 = vld [vmem:[%s2277_s4 + $0x30] sm:$0xff]  ;;  %v973_v2 = vld [vmem:[%s2277_s4 + $0x38] sm:$0xff] }
  0x42   :  { %v974_v3 = vld [vmem:[%s2277_s4 + $0x40] sm:$0xff]  ;;  %v975_v4 = vld [vmem:[%s2277_s4 + $0x48] sm:$0xff]  ;;  %v1651_v6 = vld [vmem:[%s2274_s1 + $0xd0] sm:$0xff]  }
  0x43   :  { %v1650_v5 = vld [vmem:[%s2274_s1 + $0xc8] sm:$0xff]   ;;  %v976_v7 = vld [vmem:[%s2277_s4 + $0x50] sm:$0xff]  ;;  %v977_v8 = vld [vmem:[%s2277_s4 + $0x58] sm:$0xff] }
  0x44   :  { %772 = vperm.xlu0 %1622, %v690_v47   ;;  %v978_v9 = vld [vmem:[%s2277_s4 + $0x60] sm:$0xff]  ;;  %v979_v10 = vld [vmem:[%s2277_s4 + $0x68] sm:$0xff]  ;;  %v1652_v11 = vld [vmem:[%s2274_s1 + $0xd8] sm:$0xff]  }
  0x45   :  { %777 = vperm.xlu1 %1623, %v691_v48   ;;  %v1653_v12 = vld [vmem:[%s2274_s1 + $0xe0] sm:$0xff]   ;;  %v980_v13 = vld [vmem:[%s2277_s4 + $0x70] sm:$0xff]  ;;  %v981_v14 = vld [vmem:[%s2277_s4 + $0x78] sm:$0xff] }
  0x46   :  { %1565 = vmatmul.mubr.msk.bf16.gmra.mrb[32].mxu0 %vm260_vm0, %v1642_v45  ;;  %v1265_v15 = vld [vmem:[%s2279_s6] sm:$0xff]  ;;  %v1266_v16 = vld [vmem:[%s2279_s6 + $0x8] sm:$0xff]  ;;  %v1655_v18 = vld [vmem:[%s2274_s1 + $0xf0] sm:$0xff]  }
  0x47   :  { %1568 = vmatprep.mubr.msk.bf16.mxu0 %vm260_vm0, %v1643_v46  ;;  %v1654_v17 = vld [vmem:[%s2274_s1 + $0xe8] sm:$0xff]   ;;  %v1656_v19 = vld [vmem:[%s2274_s1 + $0xf8] sm:$0xff]  }
  0x48   :  { %862 = vperm.xlu0 %1622, %v708_v49   ;;  %v1659_v30 = vld [vmem:[%s2276_s3 + $0x4] ss:$8 sps:$4 sm:$0xff]  }
  0x49   :  { %867 = vperm.xlu1 %1623, %v709_v50   ;;  %1174 = vmatprep.mubr.bf16.mxu1 %v1659_v30 }
  0x4c   :  { %782 = vperm.xlu0 %1622, %v692_v53  }
  0x4d   :  { %787 = vperm.xlu1 %1623, %v693_v54  }
  0x4e   :  { %1569 = vmatmul.mubr.msk.bf16.gmra.mrb[36].mxu0 %vm260_vm0, %v1644_v51 }
  0x4f   :  { %1572 = vmatprep.mubr.msk.bf16.mxu0 %vm260_vm0, %v1645_v52 }
  0x50   :  { %984 = vperm.xlu0 %1622, %v966_v55  }
  0x51   :  { %989 = vperm.xlu1 %1623, %v967_v56  }
  0x54   :  { %994 = vperm.xlu0 %1622, %v968_v59  }
  0x55   :  { %999 = vperm.xlu1 %1623, %v969_v60  }
  0x56   :  { %1573 = vmatmul.mubr.msk.bf16.gmra.mrb[40].mxu0 %vm260_vm0, %v1646_v57 }
  0x57   :  { %1576 = vmatprep.mubr.msk.bf16.mxu0 %vm260_vm0, %v1647_v58 }
  0x58   :  { %1004 = vperm.xlu0 %1622, %v970_v61  }
  0x59   :  { %1009 = vperm.xlu1 %1623, %v971_v62  }
  0x5c   :  { %1014 = vperm.xlu0 %1622, %v972_v1  }
  0x5d   :  { %1019 = vperm.xlu1 %1623, %v973_v2  }
  0x5e   :  { %1577 = vmatmul.mubr.msk.bf16.gmra.mrb[44].mxu0 %vm260_vm0, %v1648_v63 }
  0x5f   :  { %1580 = vmatprep.mubr.msk.bf16.mxu0 %vm260_vm0, %v1649_v0 }
  0x60   :  { %1024 = vperm.xlu0 %1622, %v974_v3  }
  0x61   :  { %1029 = vperm.xlu1 %1623, %v975_v4  }
  0x64   :  { %1034 = vperm.xlu0 %1622, %v976_v7  }
  0x65   :  { %1039 = vperm.xlu1 %1623, %v977_v8  }
  0x66   :  { %1581 = vmatmul.mubr.msk.bf16.gmra.mrb[48].mxu0 %vm260_vm0, %v1650_v5 }
  0x67   :  { %1584 = vmatprep.mubr.msk.bf16.mxu0 %vm260_vm0, %v1651_v6 }
  0x68   :  { %1044 = vperm.xlu0 %1622, %v978_v9  }
  0x69   :  { %1049 = vperm.xlu1 %1623, %v979_v10  }
  0x6c   :  { %1054 = vperm.xlu0 %1622, %v980_v13  }
  0x6d   :  { %1059 = vperm.xlu1 %1623, %v981_v14  }
  0x6e   :  { %1585 = vmatmul.mubr.msk.bf16.gmra.mrb[52].mxu0 %vm260_vm0, %v1652_v11 }
  0x6f   :  { %1588 = vmatprep.mubr.msk.bf16.mxu0 %vm260_vm0, %v1653_v12 }
  0x70   :  { %1269 = vperm.xlu0 %1622, %v1265_v15  }
  0x71   :  { %1274 = vperm.xlu1 %1623, %v1266_v16  }
  0x76   :  { %1589 = vmatmul.mubr.msk.bf16.gmra.mrb[56].mxu0 %vm260_vm0, %v1654_v17 }
  0x77   :  { %1592 = vmatprep.mubr.msk.bf16.mxu0 %vm260_vm0, %v1655_v18 }
  0x7e   :  { %1593 = vmatmul.mubr.msk.bf16.gmra.mrb[60].mxu0 %vm260_vm0, %v1656_v19 }
  0x84   :  { %v2033_v20 = vpop.permute.xlu0 %792 }
  0x85   :  { %v2037_v23 = vpop.permute.xlu1 %712 }
  0x88   :  { %v2043_v26 = vpop.permute.xlu0 %797 }
  0x89   :  { %v718_v27 = vpop.permute.xlu1 %717 }
  0x8c   :  { %v2056_v33 = vpop.permute.xlu0 %802 }
  0x8d   :  { %v2058_v34 = vpop.permute.xlu1 %807 }
  0x90   :  { %v723_v37 = vpop.permute.xlu0 %722 }
  0x91   :  { %v728_v40 = vpop.permute.xlu1 %727 }
  0x94   :  { %v2068_v41 = vpop.permute.xlu0 %812 }
  0x95   :  { %v2074_v44 = vpop.permute.xlu1 %817 }
  0x98   :  { %v733_v47 = vpop.permute.xlu0 %732 }
  0x99   :  { %v738_v48 = vpop.permute.xlu1 %737 }
  0x9c   :  { %v2088_v53 = vpop.permute.xlu0 %822 }
  0x9d   :  { %v2090_v54 = vpop.permute.xlu1 %827 }
  0xa0   :  { %v743_v57 = vpop.permute.xlu0 %742 }
  0xa1   :  { %v748_v60 = vpop.permute.xlu1 %747 }
  0xa4   :  { %v2100_v61 = vpop.permute.xlu0 %832 }
  0xa5   :  { %2281 = vst [vmem:[#allocation5_spill] sm:$0xff] %v2100_v61  ;;  %v2106_v0 = vpop.permute.xlu1 %837 }
  0xa6   :  { %2282 = vst [vmem:[#allocation6_spill] sm:$0xff] %v2106_v0 }
  0xa8   :  { %v753_v3 = vpop.permute.xlu0 %752 }
  0xa9   :  { %v758_v4 = vpop.permute.xlu1 %757 }
  0xb7   :  { %v2120_v9 = vpop.permute.xlu0 %842 }
  0xb8   :  { %v2122_v10 = vpop.permute.xlu1 %847 }
  0xb9   :  { %2288 = vst [vmem:[#allocation12_spill] sm:$0xff] %v2122_v10 }
  0xbb   :  { %v763_v14 = vpop.permute.xlu0 %762 }
  0xbc   :  { %v768_v30 = vpop.permute.xlu1 %767 }
  0xd9   :  { %v1534_v21 = vpop.f32.mrb[0].mxu0 }
  0xda   :  { %v2035_v22 = vpop.f32.mrb[1].mxu0 }
  0xdb   :  { %v2039_v24 = vpop.f32.mrb[2].mxu0 }
  0xdc   :  { %v2041_v25 = vpop.f32.mrb[3].mxu0 }
  0xe1   :  { %v2045_v28 = vpop.f32.mrb[4].mxu0 }
  0xe2   :  { %v2047_v29 = vpop.f32.mrb[5].mxu0 }
  0xe3   :  { %v2052_v31 = vpop.f32.mrb[6].mxu0 }
  0xe4   :  { %v2054_v32 = vpop.f32.mrb[7].mxu0 }
  0xe9   :  { %v2060_v35 = vpop.f32.mrb[8].mxu0 }
  0xea   :  { %v2062_v36 = vpop.f32.mrb[9].mxu0 }
  0xeb   :  { %v2064_v38 = vpop.f32.mrb[10].mxu0 }
  0xec   :  { %v2066_v39 = vpop.f32.mrb[11].mxu0 }
  0xf1   :  { %v2070_v42 = vpop.f32.mrb[12].mxu0 }
  0xf2   :  { %v2072_v43 = vpop.f32.mrb[13].mxu0 }
  0xf3   :  { %v2076_v45 = vpop.f32.mrb[14].mxu0 }
  0xf4   :  { %v2078_v46 = vpop.f32.mrb[15].mxu0 }
  0xf9   :  { %v2080_v49 = vpop.f32.mrb[16].mxu0 }
  0xfa   :  { %v2082_v50 = vpop.f32.mrb[17].mxu0 }
  0xfb   :  { %v2084_v51 = vpop.f32.mrb[18].mxu0 }
  0xfc   :  { %v2086_v52 = vpop.f32.mrb[19].mxu0 }
 0x101   :  { %v2092_v55 = vpop.f32.mrb[20].mxu0 }
 0x102   :  { %v2094_v56 = vpop.f32.mrb[21].mxu0 }
 0x103   :  { %v2096_v58 = vpop.f32.mrb[22].mxu0 }
 0x104   :  { %v2098_v59 = vpop.f32.mrb[23].mxu0 }
 0x109   :  { %v2102_v62 = vpop.f32.mrb[24].mxu0 }
 0x10a   :  { %v2104_v63 = vpop.f32.mrb[25].mxu0 }
 0x10b   :  { %v2108_v1 = vpop.f32.mrb[26].mxu0 }
 0x10c   :  { %v2110_v2 = vpop.f32.mrb[27].mxu0 }
 0x10d   :  { %2283 = vst [vmem:[#allocation7_spill] sm:$0xff] %v2110_v2  ;;  %v2128_v2 = vpop.permute.xlu0 %852 }
 0x111   :  { %v2112_v5 = vpop.f32.mrb[28].mxu0 }
 0x112   :  { %2284 = vst [vmem:[#allocation8_spill] sm:$0xff] %v2112_v5  ;;  %v2114_v6 = vpop.f32.mrb[29].mxu0 }
 0x113   :  { %2285 = vst [vmem:[#allocation9_spill] sm:$0xff] %v2114_v6  ;;  %v2116_v7 = vpop.f32.mrb[30].mxu0 }
 0x114   :  { %2286 = vst [vmem:[#allocation10_spill] sm:$0xff] %v2116_v7  ;;  %v2118_v8 = vpop.f32.mrb[31].mxu0 }
 0x115   :  { %2287 = vst [vmem:[#allocation11_spill] sm:$0xff] %v2118_v8 }
 0x119   :  { %v1566_v11 = vpop.f32.mrb[32].mxu0 }
 0x11a   :  { %v648_v12 = vmax.f32 %v1534_v21, %v1566_v11  ;;  %v519_v13 = vpop.f32.mrb[33].mxu0 }
 0x11b   :  { %v646_v15 = vmax.f32 %v2035_v22, %v519_v13  ;;  %v1567_v16 = vpop.f32.mrb[34].mxu0 }
 0x11c   :  { %v872_v17 = vadd.f32 %v723_v37, %v648_v12  ;;  %v649_v18 = vmax.f32 %v2039_v24, %v1567_v16  ;;  %v522_v19 = vpop.f32.mrb[35].mxu0  ;;  %v2133_v24 = vpop.permute.xlu1 %857 }
 0x11d   :  { %v870_v7 = vadd.f32 %v2037_v23, %v646_v15  ;;  %v647_v8 = vmax.f32 %v2041_v25, %v522_v19  ;;  %v773_v15 = vpop.permute.xlu0 %772 }
 0x11e   :  { %v873_v6 = vadd.f32 %v728_v40, %v649_v18  ;;  %v904_v0 = vmax.f32 %v872_v17, 0.0 }
 0x11f   :  { %v871_v5 = vadd.f32 %v718_v27, %v647_v8  ;;  %v902_v21 = vmax.f32 %v870_v7, 0.0 }
 0x120   :  { %v905_v10 = vmax.f32 %v873_v6, 0.0 }
 0x121   :  { %v903_v11 = vmax.f32 %v871_v5, 0.0  ;;  %v1570_v61 = vpop.f32.mrb[36].mxu0 }
 0x122   :  { %v652_v22 = vmax.f32 %v2045_v28, %v1570_v61  ;;  %v535_v37 = vpop.f32.mrb[37].mxu0  ;;  %v2131_v12 = vpack.c.bf16 %v905_v10, %v904_v0  ;;  %v778_v10 = vpop.permute.xlu1 %777 }
 0x123   :  { %v650_v23 = vmax.f32 %v2047_v29, %v535_v37  ;;  %v1571_v13 = vpop.f32.mrb[38].mxu0  ;;  %v2136_v25 = vpack.c.bf16 %v903_v11, %v902_v21  ;;  %v2147_v11 = vpop.permute.xlu0 %862 }
 0x124   :  { %v876_v27 = vadd.f32 %v743_v57, %v652_v22  ;;  %v653_v40 = vmax.f32 %v2052_v31, %v1571_v13  ;;  %v538_v6 = vpop.f32.mrb[39].mxu0 }
 0x125   :  { %v874_v8 = vadd.f32 %v733_v47, %v650_v23  ;;  %v651_v5 = vmax.f32 %v2054_v32, %v538_v6 }
 0x126   :  { %v877_v7 = vadd.f32 %v748_v60, %v653_v40  ;;  %v908_v61 = vmax.f32 %v876_v27, 0.0  ;;  %v2150_v13 = vpop.permute.xlu1 %867 }
 0x127   :  { %v875_v28 = vadd.f32 %v738_v48, %v651_v5  ;;  %v906_v16 = vmax.f32 %v874_v8, 0.0 }
 0x128   :  { %v909_v0 = vmax.f32 %v877_v7, 0.0 }
 0x129   :  { %v907_v17 = vmax.f32 %v875_v28, 0.0  ;;  %v1574_v18 = vpop.f32.mrb[40].mxu0 }
 0x12a   :  { %v656_v29 = vmax.f32 %v2060_v35, %v1574_v18  ;;  %v551_v19 = vpop.f32.mrb[41].mxu0  ;;  %v2141_v21 = vpack.c.bf16 %v909_v0, %v908_v61  ;;  %v788_v0 = vpop.permute.xlu1 %787 }
 0x12b   :  { %v654_v31 = vmax.f32 %v2062_v36, %v551_v19  ;;  %v1575_v57 = vpop.f32.mrb[42].mxu0  ;;  %v2144_v47 = vpack.c.bf16 %v907_v17, %v906_v16 }
 0x12c   :  { %v880_v32 = vadd.f32 %v763_v14, %v656_v29  ;;  %v657_v60 = vmax.f32 %v2064_v38, %v1575_v57  ;;  %v554_v48 = vpop.f32.mrb[43].mxu0  ;;  %v783_v38 = vpop.permute.xlu0 %782 }
 0x12d   :  { %v878_v22 = vadd.f32 %v753_v3, %v654_v31  ;;  %v655_v37 = vmax.f32 %v2066_v39, %v554_v48 }
 0x12e   :  { %v881_v23 = vadd.f32 %v768_v30, %v657_v60  ;;  %v912_v27 = vmax.f32 %v880_v32, 0.0 }
 0x12f   :  { %v879_v35 = vadd.f32 %v758_v4, %v655_v37  ;;  %v910_v6 = vmax.f32 %v878_v22, 0.0 }
 0x130   :  { %v913_v40 = vmax.f32 %v881_v23, 0.0 }
 0x131   :  { %v911_v36 = vmax.f32 %v879_v35, 0.0  ;;  %v1578_v8 = vpop.f32.mrb[44].mxu0 }
 0x132   :  { %v660_v5 = vmax.f32 %v2070_v42, %v1578_v8  ;;  %v567_v14 = vpop.f32.mrb[45].mxu0  ;;  %v2153_v7 = vpack.c.bf16 %v913_v40, %v912_v27 }
 0x133   :  { %v658_v28 = vmax.f32 %v2072_v43, %v567_v14  ;;  %v1579_v3 = vpop.f32.mrb[46].mxu0  ;;  %v2156_v61 = vpack.c.bf16 %v911_v36, %v910_v6 }
 0x134   :  { %v884_v39 = vadd.f32 %v783_v38, %v660_v5  ;;  %v661_v30 = vmax.f32 %v2076_v45, %v1579_v3  ;;  %v570_v4 = vpop.f32.mrb[47].mxu0 }
 0x135   :  { %v882_v16 = vadd.f32 %v773_v15, %v658_v28  ;;  %v659_v17 = vmax.f32 %v2078_v46, %v570_v4 }
 0x136   :  { %v885_v18 = vadd.f32 %v788_v0, %v661_v30  ;;  %v916_v42 = vmax.f32 %v884_v39, 0.0 }
 0x137   :  { %v883_v29 = vadd.f32 %v778_v10, %v659_v17  ;;  %v914_v31 = vmax.f32 %v882_v16, 0.0 }
 0x138   :  { %v917_v19 = vmax.f32 %v885_v18, 0.0 }
 0x139   :  { %v915_v57 = vmax.f32 %v883_v29, 0.0  ;;  %v1582_v32 = vpop.f32.mrb[48].mxu0  ;;  %v2289_v29 = vld [vmem:[#allocation5_spill] sm:$0xff] }
 0x13a   :  { %v664_v43 = vmax.f32 %v2080_v49, %v1582_v32  ;;  %v583_v60 = vpop.f32.mrb[49].mxu0  ;;  %v2161_v48 = vpack.c.bf16 %v917_v19, %v916_v42  ;;  %v2290_v19 = vld [vmem:[#allocation7_spill] sm:$0xff] }
 0x13b   :  { %v662_v22 = vmax.f32 %v2082_v50, %v583_v60  ;;  %v1583_v45 = vpop.f32.mrb[50].mxu0  ;;  %v2164_v37 = vpack.c.bf16 %v915_v57, %v914_v31  ;;  %v2291_v57 = vld [vmem:[#allocation12_spill] sm:$0xff] }
 0x13c   :  { %v888_v15 = vadd.f32 %v2056_v33, %v664_v43  ;;  %v665_v46 = vmax.f32 %v2084_v51, %v1583_v45  ;;  %v586_v10 = vpop.f32.mrb[51].mxu0  ;;  %v2293_v45 = vld [vmem:[#allocation8_spill] sm:$0xff] }
 0x13d   :  { %v663_v23 = vmax.f32 %v2086_v52, %v586_v10  ;;  %v886_v35 = vadd.f32 %v2033_v20, %v662_v22  ;;  %v2294_v10 = vld [vmem:[#allocation9_spill] sm:$0xff] }
 0x13e   :  { %v889_v27 = vadd.f32 %v2058_v34, %v665_v46  ;;  %v920_v40 = vmax.f32 %v888_v15, 0.0 }
 0x13f   :  { %v887_v49 = vadd.f32 %v2043_v26, %v663_v23  ;;  %v918_v50 = vmax.f32 %v886_v35, 0.0 }
 0x140   :  { %v921_v6 = vmax.f32 %v889_v27, 0.0 }
 0x141   :  { %v1586_v36 = vpop.f32.mrb[52].mxu0  ;;  %v919_v8 = vmax.f32 %v887_v49, 0.0  ;;  %v2295_v49 = vld [vmem:[#allocation10_spill] sm:$0xff] }
 0x142   :  { %v668_v5 = vmax.f32 %v2092_v55, %v1586_v36  ;;  %v599_v14 = vpop.f32.mrb[53].mxu0  ;;  %v959_v33 = vpack.c.bf16 %v921_v6, %v920_v40 }
 0x143   :  { %v666_v51 = vmax.f32 %v2094_v56, %v599_v14  ;;  %v1587_v38 = vpop.f32.mrb[54].mxu0  ;;  %v958_v28 = vpack.c.bf16 %v919_v8, %v918_v50  ;;  %v2296_v50 = vld [vmem:[#allocation11_spill] sm:$0xff] }
 0x144   :  { %v892_v52 = vadd.f32 %v2088_v53, %v668_v5  ;;  %v669_v20 = vmax.f32 %v2096_v58, %v1587_v38  ;;  %v602_v34 = vpop.f32.mrb[55].mxu0 }
 0x145   :  { %v890_v26 = vadd.f32 %v2068_v41, %v666_v51  ;;  %v667_v3 = vmax.f32 %v2098_v59, %v602_v34  ;;  %1457 = vmatprep.subr.bf16.mxu1 %v958_v28  ;;  %v1672_v34 = vld [vmem:[%s2276_s3 + $0x54] ss:$8 sps:$4 sm:$0xff]  }
 0x146   :  { %v893_v39 = vadd.f32 %v2090_v54, %v669_v20  ;;  %1458 = vmatpush3.bf16.msra.mxu1 %v2136_v25  ;;  %v924_v56 = vmax.f32 %v892_v52, 0.0  ;;  %v1669_v52 = vld [vmem:[%s2276_s3 + $0x44] ss:$8 sps:$4 sm:$0xff]   ;;  %v1671_v20 = vld [vmem:[%s2276_s3 + $0x40] ss:$8 sps:$4 sm:$0xff]  }
 0x147   :  { %v891_v55 = vadd.f32 %v2074_v44, %v667_v3  ;;  %1459 = vmatprep.subr.bf16.mxu1 %v959_v33  ;;  %v922_v4 = vmax.f32 %v890_v26, 0.0  ;;  %v1674_v26 = vld [vmem:[%s2276_s3 + $0x50] ss:$8 sps:$4 sm:$0xff]   ;;  %v1675_v3 = vld [vmem:[%s2276_s3 + $0x64] ss:$8 sps:$4 sm:$0xff]  }
 0x148   :  { %v925_v30 = vmax.f32 %v893_v39, 0.0  ;;  %v1677_v39 = vld [vmem:[%s2276_s3 + $0x60] ss:$8 sps:$4 sm:$0xff]  }
 0x149   :  { %v923_v0 = vmax.f32 %v891_v55, 0.0  ;;  %v1590_v53 = vpop.f32.mrb[56].mxu0  ;;  %v1678_v55 = vld [vmem:[%s2276_s3 + $0x74] ss:$8 sps:$4 sm:$0xff]  }
 0x14a   :  { %v672_v58 = vmax.f32 %v2102_v62, %v1590_v53  ;;  %v615_v16 = vpop.f32.mrb[57].mxu0  ;;  %1460 = vmatpush3.bf16.msra.mxu1 %v2131_v12  ;;  %v961_v41 = vpack.c.bf16 %v925_v30, %v924_v56  ;;  %v2292_v12 = vld [vmem:[#allocation6_spill] sm:$0xff]  ;;  %v1707_v30 = vmov 0.0  }
 0x14b   :  { %v670_v59 = vmax.f32 %v2104_v63, %v615_v16  ;;  %v1591_v17 = vpop.f32.mrb[58].mxu0  ;;  %v960_v54 = vpack.c.bf16 %v923_v0, %v922_v4  ;;  %v1680_v56 = vld [vmem:[%s2276_s3 + $0x70] ss:$8 sps:$4 sm:$0xff]   ;;  %v985_v16 = vpop.permute.xlu0 %984 }
 0x14c   :  { %v896_v25 = vadd.f32 %v2120_v9, %v672_v58  ;;  %v673_v44 = vmax.f32 %v2108_v1, %v1591_v17  ;;  %v618_v18 = vpop.f32.mrb[59].mxu0 }
 0x14d   :  { %v894_v42 = vadd.f32 %v2289_v29, %v670_v59  ;;  %v671_v31 = vmax.f32 %v2290_v19, %v618_v18  ;;  %1461 = vmatprep.subr.bf16.mxu1 %v960_v54  ;;  %v990_v54 = vpop.permute.xlu1 %989 }
 0x14e   :  { %v897_v62 = vadd.f32 %v2291_v57, %v673_v44  ;;  %1462 = vmatpush3.bf16.msra.mxu1 %v2144_v47  ;;  %v928_v63 = vmax.f32 %v896_v25, 0.0 }
 0x14f   :  { %v895_v32 = vadd.f32 %v2292_v12, %v671_v31  ;;  %1463 = vmatprep.subr.bf16.mxu1 %v961_v41  ;;  %v926_v60 = vmax.f32 %v894_v42, 0.0 }
 0x150   :  { %v929_v43 = vmax.f32 %v897_v62, 0.0  ;;  %v995_v62 = vpop.permute.xlu0 %994 }
 0x151   :  { %v927_v22 = vmax.f32 %v895_v32, 0.0  ;;  %v1594_v9 = vpop.f32.mrb[60].mxu0 }
 0x152   :  { %v676_v1 = vmax.f32 %v2293_v45, %v1594_v9  ;;  %v631_v15 = vpop.f32.mrb[61].mxu0  ;;  %1464 = vmatpush3.bf16.msra.mxu1 %v2141_v21  ;;  %v963_v46 = vpack.c.bf16 %v929_v43, %v928_v63  ;;  %v1000_v43 = vpop.permute.xlu1 %999 }
 0x153   :  { %v674_v23 = vmax.f32 %v2294_v10, %v631_v15  ;;  %v1595_v35 = vpop.f32.mrb[62].mxu0  ;;  %v962_v27 = vpack.c.bf16 %v927_v22, %v926_v60 }
 0x154   :  { %v900_v47 = vadd.f32 %v2147_v11, %v676_v1  ;;  %v677_v40 = vmax.f32 %v2295_v49, %v1595_v35  ;;  %v634_v6 = vpop.f32.mrb[63].mxu0 }
 0x155   :  { %v898_v36 = vadd.f32 %v2128_v2, %v674_v23  ;;  %v675_v8 = vmax.f32 %v2296_v50, %v634_v6  ;;  %1465 = vmatprep.subr.bf16.mxu1 %v962_v27  ;;  %v1657_v2 = vld [vmem:[%s2276_s3] ss:$8 sps:$4 sm:$0xff]   ;;  %v1005_v23 = vpop.permute.xlu0 %1004 }
 0x156   :  { %v901_v5 = vadd.f32 %v2150_v13, %v677_v40  ;;  %1466 = vmatpush3.bf16.msra.mxu1 %v2156_v61  ;;  %v932_v14 = vmax.f32 %v900_v47, 0.0  ;;  %v1662_v13 = vld [vmem:[%s2276_s3 + $0x10] ss:$8 sps:$4 sm:$0xff]   ;;  %v1665_v61 = vld [vmem:[%s2276_s3 + $0x20] ss:$8 sps:$4 sm:$0xff]   ;;  %v1010_v49 = vpop.permute.xlu1 %1009 }
 0x157   :  { %v899_v21 = vadd.f32 %v2133_v24, %v675_v8  ;;  %1467 = vmatprep.subr.bf16.mxu1 %v963_v46  ;;  %v930_v51 = vmax.f32 %v898_v36, 0.0  ;;  %v1660_v24 = vld [vmem:[%s2276_s3 + $0x14] ss:$8 sps:$4 sm:$0xff]  }
 0x158   :  { %v933_v33 = vmax.f32 %v901_v5, 0.0 }
 0x159   :  { %v931_v38 = vmax.f32 %v899_v21, 0.0 }
 0x15a   :  { %1468 = vmatpush3.bf16.msra.mxu1 %v2153_v7  ;;  %v965_v11 = vpack.c.bf16 %v933_v33, %v932_v14  ;;  %v1663_v7 = vld [vmem:[%s2276_s3 + $0x24] ss:$8 sps:$4 sm:$0xff]   ;;  %v1015_v33 = vpop.permute.xlu0 %1014 }
 0x15b   :  { %v964_v28 = vpack.c.bf16 %v931_v38, %v930_v51 }
 0x15d   :  { %1469 = vmatprep.subr.bf16.mxu1 %v964_v28  ;;  %v1020_v28 = vpop.permute.xlu1 %1019 }
 0x15e   :  { %1470 = vmatpush3.bf16.msra.mxu1 %v2164_v37  ;;  %v1668_v37 = vld [vmem:[%s2276_s3 + $0x30] ss:$8 sps:$4 sm:$0xff]  }
 0x15f   :  { %1471 = vmatprep.subr.bf16.mxu1 %v965_v11 }
 0x162   :  { %1472 = vmatpush3.bf16.msra.mxu1 %v2161_v48  ;;  %v1666_v48 = vld [vmem:[%s2276_s3 + $0x34] ss:$8 sps:$4 sm:$0xff]  }
 0x163   :  { %1596 = vmatprep.subr.bf16.mxu1 %v1707_v30 }
 0x165   :  { %1175 = vmatmul.mubr.bf16.vlgmr.msra.gmra.mrb[0].mxu1 %v1657_v2 }
 0x166   :  { %1182 = vmatprep.mubr.bf16.mxu1 %v1660_v24 }
 0x16d   :  { %1183 = vmatmul.mubr.bf16.gmra.mrb[4].mxu1 %v1662_v13 }
 0x16e   :  { %1190 = vmatprep.mubr.bf16.mxu1 %v1663_v7 }
 0x175   :  { %1191 = vmatmul.mubr.bf16.gmra.mrb[8].mxu1 %v1665_v61 }
 0x176   :  { %1198 = vmatprep.mubr.bf16.mxu1 %v1666_v48 }
 0x17d   :  { %1199 = vmatmul.mubr.bf16.gmra.mrb[12].mxu1 %v1668_v37 }
 0x17e   :  { %1206 = vmatprep.mubr.bf16.mxu1 %v1669_v52 }
 0x185   :  { %1207 = vmatmul.mubr.bf16.gmra.mrb[16].mxu1 %v1671_v20  ;;  %v1025_v20 = vpop.permute.xlu0 %1024 }
 0x186   :  { %1214 = vmatprep.mubr.bf16.mxu1 %v1672_v34 }
 0x18d   :  { %1215 = vmatmul.mubr.bf16.gmra.mrb[20].mxu1 %v1674_v26 }
 0x18e   :  { %1222 = vmatprep.mubr.bf16.mxu1 %v1675_v3 }
 0x195   :  { %1223 = vmatmul.mubr.bf16.gmra.mrb[24].mxu1 %v1677_v39  ;;  %v1030_v39 = vpop.permute.xlu1 %1029 }
 0x196   :  { %1230 = vmatprep.mubr.bf16.mxu1 %v1678_v55 }
 0x19d   :  { %1231 = vmatmul.mubr.bf16.gmra.mrb[28].mxu1 %v1680_v56 }
 0x19e   :  { %1612 = vmatprep.mubr.msk.bf16.mxu1 %vm1708_vm1, %v1707_v30 }
 0x238   :  { %v1473_v4 = vpop.f32.mrb[0].mxu1 }
 0x239   :  { %v1474_v0 = vpop.f32.mrb[1].mxu1 }
 0x23a   :  { %v1475_v53 = vadd.f32 %v1474_v0, %v1473_v4  ;;  %v1476_v58 = vpop.f32.mrb[2].mxu1 }
 0x23b   :  { %v1477_v41 = vpop.f32.mrb[3].mxu1 }
 0x23c   :  { %v1177_v59 = vadd.f32 %v1475_v53, %v985_v16  ;;  %v1478_v17 = vadd.f32 %v1477_v41, %v1476_v58 }
 0x23e   :  { %v1180_v25 = vadd.f32 %v1478_v17, %v990_v54  ;;  %v1239_v44 = vmax.f32 %v1177_v59, 0.0  ;;  %v1035_v59 = vpop.permute.xlu0 %1034 }
 0x240   :  { %v1240_v18 = vmax.f32 %v1180_v25, 0.0  ;;  %v1479_v29 = vpop.f32.mrb[4].mxu1 }
 0x241   :  { %v1480_v42 = vpop.f32.mrb[5].mxu1 }
 0x242   :  { %v1257_v19 = vpack.c.bf16 %v1240_v18, %v1239_v44  ;;  %v1481_v31 = vadd.f32 %v1480_v42, %v1479_v29  ;;  %v1482_v57 = vpop.f32.mrb[6].mxu1  ;;  %v1040_v44 = vpop.permute.xlu1 %1039 }
 0x243   :  { %v1483_v12 = vpop.f32.mrb[7].mxu1 }
 0x244   :  { %v1185_v32 = vadd.f32 %v1481_v31, %v995_v62  ;;  %v1484_v63 = vadd.f32 %v1483_v12, %v1482_v57  ;;  %1597 = vmatpush3.bf16.msra.mxu1 %v1257_v19 }
 0x245   :  { %1598 = vmatprep.subr.bf16.mxu1 %v1707_v30 }
 0x246   :  { %v1188_v60 = vadd.f32 %v1484_v63, %v1000_v43  ;;  %v1241_v22 = vmax.f32 %v1185_v32, 0.0  ;;  %v1045_v32 = vpop.permute.xlu0 %1044 }
 0x248   :  { %v1242_v9 = vmax.f32 %v1188_v60, 0.0  ;;  %v1485_v45 = vpop.f32.mrb[8].mxu1 }
 0x249   :  { %v1486_v1 = vpop.f32.mrb[9].mxu1 }
 0x24a   :  { %v1258_v15 = vpack.c.bf16 %v1242_v9, %v1241_v22  ;;  %v1487_v46 = vadd.f32 %v1486_v1, %v1485_v45  ;;  %v1488_v10 = vpop.f32.mrb[10].mxu1  ;;  %v1050_v22 = vpop.permute.xlu1 %1049 }
 0x24b   :  { %v1489_v35 = vpop.f32.mrb[11].mxu1 }
 0x24c   :  { %v1193_v27 = vadd.f32 %v1487_v46, %v1005_v23  ;;  %v1490_v47 = vadd.f32 %v1489_v35, %v1488_v10  ;;  %1599 = vmatpush3.bf16.msra.mxu1 %v1258_v15 }
 0x24d   :  { %1600 = vmatprep.subr.bf16.mxu1 %v1707_v30 }
 0x24e   :  { %v1196_v40 = vadd.f32 %v1490_v47, %v1010_v49  ;;  %v1243_v6 = vmax.f32 %v1193_v27, 0.0  ;;  %v1055_v27 = vpop.permute.xlu0 %1054 }
 0x250   :  { %v1244_v36 = vmax.f32 %v1196_v40, 0.0  ;;  %v1491_v50 = vpop.f32.mrb[12].mxu1 }
 0x251   :  { %v1492_v8 = vpop.f32.mrb[13].mxu1 }
 0x252   :  { %v1259_v5 = vpack.c.bf16 %v1244_v36, %v1243_v6  ;;  %v1493_v21 = vadd.f32 %v1492_v8, %v1491_v50  ;;  %v1494_v14 = vpop.f32.mrb[14].mxu1  ;;  %v1060_v6 = vpop.permute.xlu1 %1059 }
 0x253   :  { %v1495_v51 = vpop.f32.mrb[15].mxu1 }
 0x254   :  { %v1201_v38 = vadd.f32 %v1493_v21, %v1015_v33  ;;  %v1496_v11 = vadd.f32 %v1495_v51, %v1494_v14  ;;  %1601 = vmatpush3.bf16.msra.mxu1 %v1259_v5  ;;  %v1681_v21 = vld [vmem:[%s2278_s5] sm:$0xff]   ;;  %v1270_v14 = vpop.permute.xlu0 %1269 }
 0x255   :  { %1602 = vmatprep.subr.bf16.mxu1 %v1707_v30 }
 0x256   :  { %v1204_v2 = vadd.f32 %v1496_v11, %v1020_v28  ;;  %v1245_v24 = vmax.f32 %v1201_v38, 0.0  ;;  %v1275_v11 = vpop.permute.xlu1 %1274 }
 0x258   :  { %v1246_v13 = vmax.f32 %v1204_v2, 0.0  ;;  %v1497_v7 = vpop.f32.mrb[16].mxu1 }
 0x259   :  { %v1498_v61 = vpop.f32.mrb[17].mxu1 }
 0x25a   :  { %v1260_v48 = vpack.c.bf16 %v1246_v13, %v1245_v24  ;;  %v1499_v37 = vadd.f32 %v1498_v61, %v1497_v7  ;;  %v1500_v52 = vpop.f32.mrb[18].mxu1 }
 0x25b   :  { %v1501_v34 = vpop.f32.mrb[19].mxu1 }
 0x25c   :  { %v1209_v26 = vadd.f32 %v1499_v37, %v1025_v20  ;;  %v1502_v3 = vadd.f32 %v1501_v34, %v1500_v52  ;;  %1603 = vmatpush3.bf16.msra.mxu1 %v1260_v48 }
 0x25d   :  { %1604 = vmatprep.subr.bf16.mxu1 %v1707_v30 }
 0x25e   :  { %v1212_v55 = vadd.f32 %v1502_v3, %v1030_v39  ;;  %v1247_v56 = vmax.f32 %v1209_v26, 0.0 }
 0x260   :  { %v1248_v4 = vmax.f32 %v1212_v55, 0.0  ;;  %v1503_v0 = vpop.f32.mrb[20].mxu1 }
 0x261   :  { %v1504_v53 = vpop.f32.mrb[21].mxu1 }
 0x262   :  { %v1261_v58 = vpack.c.bf16 %v1248_v4, %v1247_v56  ;;  %v1505_v16 = vadd.f32 %v1504_v53, %v1503_v0  ;;  %v1506_v41 = vpop.f32.mrb[22].mxu1 }
 0x263   :  { %v1507_v17 = vpop.f32.mrb[23].mxu1 }
 0x264   :  { %v1217_v54 = vadd.f32 %v1505_v16, %v1035_v59  ;;  %v1508_v25 = vadd.f32 %v1507_v17, %v1506_v41  ;;  %1605 = vmatpush3.bf16.msra.mxu1 %v1261_v58 }
 0x265   :  { %1606 = vmatprep.subr.bf16.mxu1 %v1707_v30 }
 0x266   :  { %v1220_v18 = vadd.f32 %v1508_v25, %v1040_v44  ;;  %v1249_v29 = vmax.f32 %v1217_v54, 0.0 }
 0x268   :  { %v1250_v42 = vmax.f32 %v1220_v18, 0.0  ;;  %v1509_v19 = vpop.f32.mrb[24].mxu1 }
 0x269   :  { %v1510_v31 = vpop.f32.mrb[25].mxu1 }
 0x26a   :  { %v1262_v57 = vpack.c.bf16 %v1250_v42, %v1249_v29  ;;  %v1511_v62 = vadd.f32 %v1510_v31, %v1509_v19  ;;  %v1512_v12 = vpop.f32.mrb[26].mxu1 }
 0x26b   :  { %v1513_v63 = vpop.f32.mrb[27].mxu1 }
 0x26c   :  { %v1225_v43 = vadd.f32 %v1511_v62, %v1045_v32  ;;  %v1514_v60 = vadd.f32 %v1513_v63, %v1512_v12  ;;  %1607 = vmatpush3.bf16.msra.mxu1 %v1262_v57 }
 0x26d   :  { %1608 = vmatprep.subr.bf16.mxu1 %v1707_v30 }
 0x26e   :  { %v1228_v9 = vadd.f32 %v1514_v60, %v1050_v22  ;;  %v1251_v45 = vmax.f32 %v1225_v43, 0.0 }
 0x270   :  { %v1252_v1 = vmax.f32 %v1228_v9, 0.0  ;;  %v1515_v15 = vpop.f32.mrb[28].mxu1 }
 0x271   :  { %v1516_v46 = vpop.f32.mrb[29].mxu1 }
 0x272   :  { %v1263_v10 = vpack.c.bf16 %v1252_v1, %v1251_v45  ;;  %v1517_v23 = vadd.f32 %v1516_v46, %v1515_v15  ;;  %v1518_v35 = vpop.f32.mrb[30].mxu1 }
 0x273   :  { %v1519_v47 = vpop.f32.mrb[31].mxu1 }
 0x274   :  { %v1233_v49 = vadd.f32 %v1517_v23, %v1055_v27  ;;  %v1520_v40 = vadd.f32 %v1519_v47, %v1518_v35  ;;  %1609 = vmatpush3.bf16.msra.mxu1 %v1263_v10 }
 0x275   :  { %1610 = vmatprep.subr.bf16.mxu1 %v1707_v30 }
 0x276   :  { %v1236_v36 = vadd.f32 %v1520_v40, %v1060_v6  ;;  %v1253_v50 = vmax.f32 %v1233_v49, 0.0 }
 0x278   :  { %v1254_v8 = vmax.f32 %v1236_v36, 0.0 }
 0x27a   :  { %v1264_v5 = vpack.c.bf16 %v1254_v8, %v1253_v50 }
 0x27c   :  { %1611 = vmatpush3.bf16.msra.mxu1 %v1264_v5 }
 0x27f   :  { %1613 = vmatmul.mubr.bf16.vlgmr.msra.gmra.mrb[32].mxu1 %v1681_v21 }
 0x352   :  { %v1317_v33 = vpop.f32.mrb[32].mxu1 }
 0x353   :  { %v1318_v51 = vadd.f32 %v1317_v33, %v1270_v14  ;;  %v1614_v38 = vpop.f32.mrb[33].mxu1 }
 0x354   :  { %v1320_v28 = vpop.f32.mrb[34].mxu1 }
 0x355   :  { %1324 = vst [vmem:[#allocation2] sm:$0xff] %v1318_v51  ;;  %v1321_v30 = vadd.f32 %v1320_v28, %v1275_v11  ;;  %v1615_v2 = vpop.f32.mrb[35].mxu1 }
 0x357   :  { %1325 = vst [vmem:[#allocation2 + $0x8] sm:$0xff] %v1321_v30 }
 0x358   :  { %1693 = shalt.err (!%p1690_p4)
}
 0x359   :  { %s1694_s25 = scalar_lea.hbm %s2280_s7, 256 }
 0x35a   :  { %p1695_p5 = scmp.ne.s32.totalorder %s2280_s7, %s1694_s25  ;;  %p1698_p6 = scmp.lt.u32.totalorder %s1694_s25, %s2280_s7 }
 0x35c   :  { %p1700_p7 = pnand %p1698_p6, %p1695_p5 }
 0x35e   :  { %1703 = shalt.err (!%p1700_p7)
}
 0x35f   :  { %s1710_s30 = smov 128   ;;  %s1711_s8 = smov 8  }
 0x360   :  { %1337 = dma.vmem_to_hbm [thread:$0]  %s1332_s22, 256, %s2280_s7, [#allocation3], %s1710_s30, %s1710_s30, %s1711_s8  }
 0x361   :  { %1704 = dma.done.wait [#allocation3], 256  }
 0x362   :  { %1705 = vsyncadd [#allocation3], 4294967040 }
 0x363   :  { %1341 = vsyncpa [#allocation3], 1 }

</bundles_post_ra>
